<compile_context>
chip_gen: v6e
topology: v6e:2x2x1
jax: 0.10.0
libtpu: 0.0.40
codegen_flags: <defaults>
</compile_context>

<pallas_src>
import functools

import jax
import jax.numpy as jnp
from jax.experimental import pallas as pl
from jax.experimental.pallas import tpu as pltpu

LANES = 128
SUBLANES = 8
CHUNK = SUBLANES * LANES  # 1024: alignment unit of the kernel prefix


def _bce_kernel(x_ref, t_ref, o_ref, *, tile_rows, total_blocks, tail_rows,
                needs_row_mask, needs_block_guard):
    c = pl.program_id(0)              # core / leading-parallel index
    i = pl.program_id(1)              # sequential block index within the core

    @pl.when(i == 0)
    def _():
        o_ref[...] = jnp.zeros_like(o_ref)

    x = x_ref[...].astype(jnp.float32)
    t = t_ref[...].astype(jnp.float32)

    # Stable log-sigmoid (clamped at -100 to match torch.nn.BCELoss):
    #   log p     = min(x, 0) - log(1 + exp(-|x|))
    #   log (1-p) = log p - x
    softplus = jnp.log(1.0 + jnp.exp(-jnp.abs(x)))
    log_p = jnp.minimum(x, 0.0) - softplus
    log_1mp = jnp.maximum(log_p - x, -100.0)
    log_p = jnp.maximum(log_p, -100.0)
    # Un-negated log-likelihood (= -loss); the wrapper negates the scalar sum.
    ll = t * (log_p - log_1mp) + log_1mp

    def fold(vals):
        # (tile_rows, 128) -> (8, 128) partial sum with vreg-wise VPU adds,
        # accumulated into the resident per-core output block.
        # TODO(synk): if a bundle dump ever shows this materializing a VMEM
        # temporary, rewrite as an unrolled fori_loop over 8-row ref slabs.
        o_ref[...] += jnp.sum(
            vals.reshape(tile_rows // SUBLANES, SUBLANES, LANES), axis=0)

    block = c * pl.num_programs(1) + i    # nominal (unclamped) block index

    if not needs_row_mask and not needs_block_guard:
        # Fully aligned case (statically known): pure streaming accumulate.
        fold(ll)
    elif needs_row_mask:
        # Only the final real block is partial; its DMA reads an undefined
        # boundary region which must be masked out (row-granular; the valid
        # row count is a multiple of 8).
        @pl.when(block == total_blocks - 1)
        def _():
            row_ids = jax.lax.broadcasted_iota(jnp.int32, (tile_rows, LANES), 0)
            fold(jnp.where(row_ids < tail_rows, ll, 0.0))

        # Earlier blocks are full; phantom duplicate blocks
        # (block >= total_blocks) contribute nothing.
        @pl.when(block < total_blocks - 1)
        def _():
            fold(ll)
    else:
        # Only phantom duplicate blocks (from the multi-core split) need a
        # whole-block guard.
        @pl.when(block < total_blocks)
        def _():
            fold(ll)


def _log_likelihood_sum(x, t):
    """Plain-jnp clamped BCE log-likelihood sum (for the ragged tail)."""
    x = x.astype(jnp.float32)
    t = t.astype(jnp.float32)
    softplus = jnp.log(1.0 + jnp.exp(-jnp.abs(x)))
    log_p = jnp.minimum(x, 0.0) - softplus
    log_1mp = jnp.maximum(log_p - x, -100.0)
    log_p = jnp.maximum(log_p, -100.0)
    return jnp.sum(t * (log_p - log_1mp) + log_1mp)


def _device_profile():
    """(tensorcores per chip, max tile rows) for the local TPU generation."""
    try:
        kind = jax.devices()[0].device_kind.lower()
    except Exception:  # pragma: no cover
        return 1, 2048
    if "7" in kind:   # v7x: 2 TensorCores, 3.2 TB/s HBM -> bigger tiles
        return 2, 4096
    return 1, 2048


def _partial_sums(x2, t2, *, rows, tile_rows, num_cores, core_parallel):
    """Pallas call returning per-core (8, 128) partial log-likelihood sums."""
    total_blocks = pl.cdiv(rows, tile_rows)
    inner = pl.cdiv(total_blocks, num_cores)
    grid_blocks = num_cores * inner

    if grid_blocks == total_blocks:
        in_map = lambda c, i: (c * inner + i, 0)
    else:
        # Clamp so phantom blocks DMA an in-range (duplicate) tile; the
        # in-kernel block guard keeps them out of the sum.
        in_map = lambda c, i: (jnp.minimum(c * inner + i, total_blocks - 1), 0)

    in_spec = pl.BlockSpec((tile_rows, LANES), in_map)
    out_spec = pl.BlockSpec((SUBLANES, LANES), lambda c, i: (c, 0))

    if core_parallel:
        semantics = (pltpu.CORE_PARALLEL, pltpu.ARBITRARY)
    else:
        semantics = ("arbitrary", "arbitrary")

    kernel = functools.partial(
        _bce_kernel,
        tile_rows=tile_rows,
        total_blocks=total_blocks,
        tail_rows=rows - (total_blocks - 1) * tile_rows,
        needs_row_mask=(rows % tile_rows) != 0,
        needs_block_guard=grid_blocks > total_blocks,
    )

    return pl.pallas_call(
        kernel,
        out_shape=jax.ShapeDtypeStruct((num_cores * SUBLANES, LANES), jnp.float32),
        grid_spec=pltpu.PrefetchScalarGridSpec(
            num_scalar_prefetch=0,
            grid=(num_cores, inner),
            in_specs=[in_spec, in_spec],
            out_specs=out_spec,
        ),
        compiler_params=pltpu.CompilerParams(
            dimension_semantics=semantics,
            vmem_limit_bytes=32 * 1024 * 1024,
        ),
    )(x2, t2)


def bce_loss_2d(logits, targets):
    """Equivalent of BCELoss2d.forward(logits, targets) -> scalar mean loss."""
    # TODO(synk): optional per-element `weight` tensor of nn.BCELoss is not
    # implemented (module default weight=None, size_average=True -> mean).
    assert logits.shape == targets.shape
    flat_x = logits.reshape(-1)
    flat_t = targets.reshape(-1)
    n = flat_x.shape[0]

    num_cores, max_tile_rows = _device_profile()

    # The 1024-aligned prefix goes through the kernel; the <1024-element ragged
    # tail (if any) is negligible and handled with plain jnp so the common
    # aligned case needs no padding / full-array copy at all.
    n_kernel = (n // CHUNK) * CHUNK
    ll_tail = jnp.float32(0.0)
    if n_kernel < n:
        ll_tail = _log_likelihood_sum(flat_x[n_kernel:], flat_t[n_kernel:])
    if n_kernel == 0:
        return -ll_tail / jnp.float32(n)
    if n_kernel < n:
        # Only copies in the unaligned case, and only the prefix slice (the
        # inputs never round-trip through a padded full-size array).
        flat_x = flat_x[:n_kernel]
        flat_t = flat_t[:n_kernel]

    rows = n_kernel // LANES            # multiple of 8
    x2 = flat_x.reshape(rows, LANES)    # free for contiguous row-major inputs
    t2 = flat_t.reshape(rows, LANES)

    # Largest block that fits comfortably; multiple of 8 and <= rows so the
    # only boundary handling ever needed is a partial *final* block.
    tile_rows = min(max_tile_rows, rows)

    try:
        partials = _partial_sums(x2, t2, rows=rows, tile_rows=tile_rows,
                                 num_cores=num_cores,
                                 core_parallel=num_cores > 1)
    except Exception:
        if num_cores == 1:
            raise
        # Safe fallback if CORE_PARALLEL is unavailable on this build/chip.
        partials = _partial_sums(x2, t2, rows=rows, tile_rows=tile_rows,
                                 num_cores=1, core_parallel=False)

    return -(jnp.sum(partials) + ll_tail) / jnp.float32(n)


if __name__ == "__main__":
    def reference(logits, targets):
        # Pure-JAX reference (sigmoid + mean BCE with torch's -100 log clamp).
        p = jax.nn.sigmoid(logits).reshape(-1)
        t = targets.reshape(-1)
        return jnp.mean(-(t * jnp.maximum(jnp.log(p), -100.0)
                          + (1.0 - t) * jnp.maximum(jnp.log(1.0 - p), -100.0)))

    key = jax.random.PRNGKey(0)
    k1, k2, k3, k4 = jax.random.split(key, 4)

    # Shape implied by the UNet usage: NCHW logits + {0,1} target masks.
    logits = jax.random.normal(k1, (2, 4, 16, 16), dtype=jnp.float32)
    targets = (jax.random.uniform(k2, (2, 4, 16, 16)) > 0.5).astype(jnp.float32)
    loss = bce_loss_2d(logits, targets)
    jax.block_until_ready(loss)
    ref = reference(logits, targets)
    assert jnp.allclose(loss, ref, rtol=1e-5, atol=1e-5), (loss, ref)

    # A non-1024-aligned shape exercises the plain-jnp tail + prefix path.
    logits2 = jax.random.normal(k3, (2, 3, 17, 13), dtype=jnp.float32)
    targets2 = (jax.random.uniform(k4, (2, 3, 17, 13)) > 0.5).astype(jnp.float32)
    loss2 = bce_loss_2d(logits2, targets2)
    jax.block_until_ready(loss2)
    ref2 = reference(logits2, targets2)
    assert jnp.allclose(loss2, ref2, rtol=1e-5, atol=1e-5), (loss2, ref2)

    print("KERNEL_OK")
</pallas_src>

<mosaic_0001>
module attributes {stable_mosaic.version = 11 : i64} {
  func.func @_bce_kernel(%arg0: i32, %arg1: i32, %arg2: memref<16x128xf32, #tpu.memory_space<vmem>>, %arg3: memref<16x128xf32, #tpu.memory_space<vmem>>, %arg4: memref<8x128xf32, #tpu.memory_space<vmem>>) attributes {dimension_semantics = [#tpu.dimension_semantics<arbitrary>, #tpu.dimension_semantics<arbitrary>], iteration_bounds = array<i64: 1, 1>, scalar_prefetch = 0 : i64, scratch_operands = 0 : i64, tpu.core_type = #tpu.core_type<tc>, window_params = [{transform_indices = @transform_0, window_bounds = array<i64: 16, 128>}, {transform_indices = @transform_1, window_bounds = array<i64: 16, 128>}, {transform_indices = @transform_2, window_bounds = array<i64: 8, 128>}]} {
    %c0_i32 = arith.constant 0 : i32
    %0 = arith.cmpi eq, %arg1, %c0_i32 : i32
    %1 = arith.extui %0 : i1 to i32
    %c0_i32_0 = arith.constant 0 : i32
    %2 = arith.cmpi ne, %1, %c0_i32_0 : i32
    scf.if %2 {
      %cst_13 = arith.constant 0.000000e+00 : f32
      %28 = vector.broadcast %cst_13 : f32 to vector<8x128xf32>
      %c0_14 = arith.constant 0 : index
      %c0_15 = arith.constant 0 : index
      %29 = vector.load %arg4[%c0_14, %c0_15] : memref<8x128xf32, #tpu.memory_space<vmem>>, vector<8x128xf32>
      tpu.vector_store %arg4[%c0_14, %c0_15], %28 {strides = array<i32>} : memref<8x128xf32, #tpu.memory_space<vmem>>, vector<8x128xf32>,
    } else {
    }
    %c0 = arith.constant 0 : index
    %c0_1 = arith.constant 0 : index
    %3 = vector.load %arg2[%c0, %c0_1] : memref<16x128xf32, #tpu.memory_space<vmem>>, vector<16x128xf32>
    %c0_2 = arith.constant 0 : index
    %c0_3 = arith.constant 0 : index
    %4 = vector.load %arg3[%c0_2, %c0_3] : memref<16x128xf32, #tpu.memory_space<vmem>>, vector<16x128xf32>
    %5 = math.absf %3 : vector<16x128xf32>
    %cst = arith.constant 0.000000e+00 : f32
    %6 = vector.broadcast %cst : f32 to vector<16x128xf32>
    %7 = arith.subf %6, %5 : vector<16x128xf32>
    %8 = math.exp %7 : vector<16x128xf32>
    %cst_4 = arith.constant 1.000000e+00 : f32
    %9 = vector.broadcast %cst_4 : f32 to vector<16x128xf32>
    %10 = arith.addf %9, %8 : vector<16x128xf32>
    %11 = math.log %10 : vector<16x128xf32>
    %cst_5 = arith.constant 0.000000e+00 : f32
    %12 = vector.broadcast %cst_5 : f32 to vector<16x128xf32>
    %13 = arith.minimumf %3, %12 : vector<16x128xf32>
    %14 = arith.subf %13, %11 : vector<16x128xf32>
    %15 = arith.subf %14, %3 : vector<16x128xf32>
    %cst_6 = arith.constant -1.000000e+02 : f32
    %16 = vector.broadcast %cst_6 : f32 to vector<16x128xf32>
    %17 = arith.maximumf %15, %16 : vector<16x128xf32>
    %cst_7 = arith.constant -1.000000e+02 : f32
    %18 = vector.broadcast %cst_7 : f32 to vector<16x128xf32>
    %19 = arith.maximumf %14, %18 : vector<16x128xf32>
    %20 = arith.subf %19, %17 : vector<16x128xf32>
    %21 = arith.mulf %4, %20 : vector<16x128xf32>
    %22 = arith.addf %21, %17 : vector<16x128xf32>
    %c0_8 = arith.constant 0 : index
    %c0_9 = arith.constant 0 : index
    %23 = vector.load %arg4[%c0_8, %c0_9] : memref<8x128xf32, #tpu.memory_space<vmem>>, vector<8x128xf32>
    %24 = vector.shape_cast %22 : vector<16x128xf32> to vector<2x8x128xf32>
    %cst_10 = arith.constant dense<0.000000e+00> : vector<8x128xf32>
    %25 = vector.multi_reduction <add>, %24, %cst_10 [0] : vector<2x8x128xf32> to vector<8x128xf32>
    %26 = arith.addf %23, %25 : vector<8x128xf32>
    %c0_11 = arith.constant 0 : index
    %c0_12 = arith.constant 0 : index
    %27 = vector.load %arg4[%c0_11, %c0_12] : memref<8x128xf32, #tpu.memory_space<vmem>>, vector<8x128xf32>
    tpu.vector_store %arg4[%c0_11, %c0_12], %26 {strides = array<i32>} : memref<8x128xf32, #tpu.memory_space<vmem>>, vector<8x128xf32>,
    return
  }
  func.func @transform_0(%arg0: i32, %arg1: i32) -> (i32, i32) {
    %c1_i32 = arith.constant 1 : i32
    %0 = arith.muli %arg0, %c1_i32 : i32
    %1 = arith.addi %0, %arg1 : i32
    %c0_i32 = arith.constant 0 : i32
    %c0_i32_0 = arith.constant 0 : i32
    return %1, %c0_i32 : i32, i32
  }
  func.func @transform_1(%arg0: i32, %arg1: i32) -> (i32, i32) {
    %c1_i32 = arith.constant 1 : i32
    %0 = arith.muli %arg0, %c1_i32 : i32
    %1 = arith.addi %0, %arg1 : i32
    %c0_i32 = arith.constant 0 : i32
    %c0_i32_0 = arith.constant 0 : i32
    return %1, %c0_i32 : i32, i32
  }
  func.func @transform_2(%arg0: i32, %arg1: i32) -> (i32, i32) {
    %c0_i32 = arith.constant 0 : i32
    %c0_i32_0 = arith.constant 0 : i32
    return %arg0, %c0_i32 : i32, i32
  }
}

</mosaic_0001>

<bundles_post_ra>
// kernel: tpu_custom_call.1
= control target key start
LH: loop header
LB: loop body
LE: loop exit
PB: predicated region body
PF: predicated region fallthrough
CT: control target
= control target key end

     0   :  { %7 = vsyncpa [#allocation3], 0  ;;  %s220_s0 = inlined_call_operand.hbm [shape: f32[16,128], index: 0, kind: input, shape index: {}]   ;;  %s221_s1 = inlined_call_operand.hbm [shape: f32[16,128], index: 1, kind: input, shape index: {}]   ;;  %s222_s2 = inlined_call_operand.hbm [shape: f32[8,128], index: 2, kind: output, shape index: {}]  }
   0x1   :  { %8 = vsyncpa [#allocation6], 0 }
   0x2   :  { %9 = vsyncpa [#allocation4], 0  ;;  %s191_s9 = smov [#allocation2]  }
   0x3   :  { %s19_s10 = sshll.u32 %s191_s9, 4  ;;  %s20_s10 = int_to_ptr.vmem [resolvable:$true] %s19_s10 }
   0x4   :  { %s133_s11 = scalar_lea.vmem %s20_s10, 256  ;;  %p138_p1 = scmp.lt.s32.totalorder %s20_s10, %s20_s10 }
   0x5   :  { %p134_p0 = scmp.ne.s32.totalorder %s20_s10, %s133_s11  ;;  %p139_p2 = scmp.lt.s32.totalorder %s133_s11, %s133_s11 }
   0x7   :  { %p140_p3 = por %p139_p2, %p138_p1 }
   0x9   :  { %p141_p4 = pnand %p140_p3, %p134_p0 }
   0xb   :  { %144 = shalt.err (!%p141_p4)
}
   0xc   :  { %s192_s12 = smov 128   ;;  %s193_s13 = smov 8  }
   0xd   :  { %25 = dma.hbm_to_vmem [thread:$0]  %s220_s0, 256, %s20_s10, [#allocation3], %s192_s12, %s192_s12, %s193_s13  }
   0xe   :  { %s194_s16 = smov [#allocation5]  }
   0xf   :  { %s35_s17 = sshll.u32 %s194_s16, 4  ;;  %s36_s17 = int_to_ptr.vmem [resolvable:$true] %s35_s17 }
  0x10   :  { %s153_s18 = scalar_lea.vmem %s36_s17, 256  ;;  %p158_p6 = scmp.lt.s32.totalorder %s36_s17, %s36_s17 }
  0x11   :  { %p154_p5 = scmp.ne.s32.totalorder %s36_s17, %s153_s18  ;;  %p159_p7 = scmp.lt.s32.totalorder %s153_s18, %s153_s18 }
  0x13   :  { %p160_p8 = por %p159_p7, %p158_p6 }
  0x15   :  { %p161_p9 = pnand %p160_p8, %p154_p5 }
  0x17   :  { %164 = shalt.err (!%p161_p9)
}
  0x18   :  { %41 = dma.hbm_to_vmem [thread:$0]  %s221_s1, 256, %s36_s17, [#allocation6], %s192_s12, %s192_s12, %s193_s13  }
  0x19   :  { %185 = dma.done.wait [#allocation3], 256  }
  0x1a   :  { %186 = vsyncadd [#allocation3], 4294967040 }
  0x1b   :  { %187 = dma.done.wait [#allocation6], 256  }
  0x1c   :  { %188 = vsyncadd [#allocation6], 4294967040  ;;  %v57_v0 = vld [vmem:[#allocation2] sm:$0xff]  ;;  %v58_v1 = vld [vmem:[#allocation2 + $0x8] sm:$0xff]  ;;  %s195_s0 = smov [#allocation7]  }
  0x1d   :  { %v61_v2 = vand.u32 2147483647, %v57_v0  ;;  %v62_v3 = vand.u32 2147483647, %v58_v1  ;;  %v75_v12 = vmin.f32 %v57_v0, 0.0  ;;  %v76_v14 = vmin.f32 %v58_v1, 0.0 }
  0x1e   :  { %v59_v25 = vld [vmem:[#allocation5] sm:$0xff]  ;;  %v60_v27 = vld [vmem:[#allocation5 + $0x8] sm:$0xff]  ;;  %s101_s1 = sshll.u32 %s195_s0, 4  ;;  %s102_s1 = int_to_ptr.vmem [resolvable:$true] %s101_s1 }
  0x1f   :  { %v63_v4 = vsub.f32 0.0, %v61_v2  ;;  %v64_v5 = vsub.f32 0.0, %v62_v3  ;;  %s165_s21 = scalar_lea.vmem %s102_s1, 128  ;;  %p170_p11 = scmp.lt.s32.totalorder %s102_s1, %s102_s1 }
  0x20   :  { %p166_p10 = scmp.ne.s32.totalorder %s102_s1, %s165_s21  ;;  %p171_p12 = scmp.lt.s32.totalorder %s165_s21, %s165_s21 }
  0x21   :  { %v65_v6 = vmul.f32 1.442695, %v63_v4  ;;  %v67_v7 = vmul.f32 1.442695, %v64_v5 }
  0x22   :  { %p172_p13 = por %p171_p12, %p170_p11 }
  0x23   :  { %117 = vpow2.f32 %v65_v6 }
  0x24   :  { %119 = vpow2.f32 %v67_v7  ;;  %p173_p0 = pnand %p172_p13, %p166_p10 }
  0x30   :  { %v118_v8 = vpop.eup %117 }
  0x31   :  { %v120_v9 = vpop.eup %119  ;;  %v69_v10 = vadd.f32 1.0, %v118_v8 }
  0x32   :  { %v70_v11 = vadd.f32 1.0, %v120_v9 }
  0x33   :  { %121 = vlog2.f32 %v69_v10 }
  0x34   :  { %123 = vlog2.f32 %v70_v11 }
  0x40   :  { %v122_v13 = vpop.eup %121 }
  0x41   :  { %v124_v15 = vpop.eup %123  ;;  %v72_v16 = vmul.f32 0.6931472, %v122_v13 }
  0x42   :  { %v74_v17 = vmul.f32 0.6931472, %v124_v15 }
  0x43   :  { %v77_v18 = vsub.f32 %v75_v12, %v72_v16 }
  0x44   :  { %v78_v19 = vsub.f32 %v76_v14, %v74_v17 }
  0x45   :  { %v79_v20 = vsub.f32 %v77_v18, %v57_v0  ;;  %v83_v21 = vmax.f32 %v77_v18, -100.0 }
  0x46   :  { %v80_v22 = vsub.f32 %v78_v19, %v58_v1  ;;  %v84_v23 = vmax.f32 %v78_v19, -100.0 }
  0x47   :  { %v81_v24 = vmax.f32 %v79_v20, -100.0 }
  0x48   :  { %v82_v26 = vmax.f32 %v80_v22, -100.0 }
  0x49   :  { %v85_v28 = vsub.f32 %v83_v21, %v81_v24 }
  0x4a   :  { %v86_v29 = vsub.f32 %v84_v23, %v82_v26 }
  0x4b   :  { %v87_v30 = vmul.f32 %v85_v28, %v59_v25 }
  0x4c   :  { %v88_v31 = vmul.f32 %v86_v29, %v60_v27 }
  0x4d   :  { %v89_v32 = vadd.f32 %v87_v30, %v81_v24 }
  0x4e   :  { %v90_v33 = vadd.f32 %v88_v31, %v82_v26 }
  0x50   :  { %v92_v34 = vadd.f32 %v90_v33, %v89_v32 }
  0x52   :  { %94 = vst [vmem:[#allocation7] sm:$0xff] %v92_v34 }
  0x53   :  { %176 = shalt.err (!%p173_p0)
}
  0x54   :  { %104 = dma.vmem_to_hbm [thread:$0]  %s102_s1, 128, %s222_s2, [#allocation4]  }
  0x55   :  { %189 = dma.done.wait [#allocation4], 128  }
  0x56   :  { %190 = vsyncadd [#allocation4], 4294967168 }
  0x57   :  { %108 = vsyncpa [#allocation3], 1 }
  0x58   :  { %109 = vsyncpa [#allocation6], 1 }
  0x59   :  { %110 = vsyncpa [#allocation4], 1 }

</bundles_post_ra>
